<compile_context>
chip_gen: v7x
topology: tpu7x:2x2x1
jax: 0.10.0
libtpu: 0.0.40
codegen_flags: <defaults>
</compile_context>

<pallas_src>
import math
from functools import partial

import numpy as np
import jax
import jax.numpy as jnp
from jax.experimental import pallas as pl
from jax.experimental.pallas import tpu as pltpu


def _round_up(x: int, m: int) -> int:
    return ((x + m - 1) // m) * m


# ----------------------------------------------------------------------------- kernel
def _make_kernel(use_relu: bool):
    def head_kernel(x_ref, w_ref, b_ref, o_ref):
        # x_ref: (tm, K)   w_ref: (K, Gp)   b_ref: (1, Gp)   o_ref: (tm, Gp)
        x = x_ref[...]
        w = w_ref[...]
        # cast X to the (possibly bf16) weight dtype on the VPU; accumulate in f32 on the MXU
        y = jnp.dot(x.astype(w.dtype), w, preferred_element_type=jnp.float32)
        y = y + b_ref[...]
        if use_relu:
            y = jnp.maximum(y, 0.0)
        o_ref[...] = y
    return head_kernel


# ------------------------------------------------------------------- device forward
@partial(jax.jit, static_argnames=("activation", "tm"))
def _device_forward(tokens, w_bd, b_bd, activation, tm):
    """tokens: [B, bin_no, D]   w_bd: [bin_no*D, Gp]   b_bd: [1, Gp]  ->  [B, Gp] f32"""
    B, bin_no, D = tokens.shape
    K = bin_no * D
    Kw, Gp = w_bd.shape
    assert Kw == K, "packed weight K dim must equal bin_no*D"

    x = tokens.reshape(B, K)                       # free row-major reshape, no pad

    x_bytes = x.dtype.itemsize
    w_bytes = w_bd.dtype.itemsize
    # double-buffered X tile + resident W + bias + double-buffered output tile (+ headroom)
    vmem_need = (2 * tm * K * x_bytes
                 + K * Gp * w_bytes
                 + Gp * 4
                 + 2 * tm * Gp * 4)
    vmem_limit = int(min(max(vmem_need + (4 << 20), 16 << 20), 48 << 20))

    cost = pl.CostEstimate(
        flops=2 * B * K * Gp,
        transcendentals=0,
        bytes_accessed=B * K * x_bytes + K * Gp * w_bytes + Gp * 4 + B * Gp * 4,
    )

    out = pl.pallas_call(
        _make_kernel(activation),
        out_shape=jax.ShapeDtypeStruct((B, Gp), jnp.float32),
        grid=(pl.cdiv(B, tm),),
        in_specs=[
            pl.BlockSpec((tm, K), lambda i: (i, 0)),     # streamed X tiles
            pl.BlockSpec((K, Gp), lambda i: (0, 0)),     # weight stays VMEM-resident
            pl.BlockSpec((1, Gp), lambda i: (0, 0)),     # bias stays VMEM-resident
        ],
        out_specs=pl.BlockSpec((tm, Gp), lambda i: (i, 0)),
        compiler_params=pltpu.CompilerParams(
            dimension_semantics=("parallel",),           # shard M tiles across v7x's 2 TCs
            vmem_limit_bytes=vmem_limit),
        cost_estimate=cost,
    )(x, w_bd, b_bd)
    return out


# --------------------------------------------------------------------- host wrapper
def mtl_binning_heads_forward(tokens, w_bd, b_bd, genes_per_bin,
                              activation=False, check_finite=True):
    """
    tokens        : [B, bin_no, D]  (MTL_tokens)
    w_bd, b_bd    : block-diagonal packed params (see pack_block_diagonal)
    genes_per_bin : python list of ints (len == bin_no)
    returns       : list of (1,1) arrays, same ordering as the PyTorch module
                    (bin-major, then batch, then gene)
    """
    B, bin_no, D = tokens.shape
    tm = B if B <= 256 else 256                    # full-dim block for small B, else 256-row tiles

    out = _device_forward(tokens, w_bd, b_bd, activation, tm)
    slab = np.asarray(jax.device_get(out))         # single device->host copy, [B, Gp]

    G_total = sum(genes_per_bin)
    if check_finite and not np.isfinite(slab[:, :G_total]).all():
        raise ValueError('Detected NaN or Inf in MTL head output! pls check backbone '
                         'model or MTL framework model')

    # TODO(synk): list-of-(1,1)-scalars return is host-side glue kept only to mirror the
    # PyTorch module's contract; downstream code should prefer the [B, G_total] slab.
    single_element_pred = []
    off = 0
    for g in genes_per_bin:
        bin_block = slab[:, off:off + g]           # [B, G_i]
        for v in bin_block.reshape(-1):
            single_element_pred.append(np.asarray(v, dtype=np.float32).reshape(1, 1))
        off += g
    return single_element_pred


def pack_block_diagonal(weight_list, bias_list, D, genes_per_bin, param_dtype=jnp.float32):
    """Stack per-bin torch-style (G_i, D) weights / (G_i,) biases into one block-diagonal
    [bin_no*D, Gp] weight (lane-padded Gp) and [1, Gp] bias.  Host-side NumPy, one time.
    param_dtype=jnp.bfloat16 halves weight HBM/VMEM bytes on v6e/v7x (f32 accumulation kept)."""
    bin_no = len(genes_per_bin)
    G_total = sum(genes_per_bin)
    Gp = _round_up(max(G_total, 1), 128)           # lane-dense output slab
    K = bin_no * D                                 # no K padding needed
    W = np.zeros((K, Gp), dtype=np.float32)
    b = np.zeros((1, Gp), dtype=np.float32)
    off = 0
    for i, g in enumerate(genes_per_bin):
        if g:
            W[i * D:(i + 1) * D, off:off + g] = np.asarray(weight_list[i]).T   # (D, G_i)
            b[0, off:off + g] = np.asarray(bias_list[i]).reshape(-1)
        off += g
    return jnp.asarray(W, dtype=param_dtype), jnp.asarray(b, dtype=jnp.float32)


def xavier_uniform(key, fan_out, fan_in, dtype=jnp.float32):
    # matches torch.nn.init.xavier_uniform_ on a (fan_out, fan_in) weight
    limit = math.sqrt(6.0 / (fan_in + fan_out))
    return jax.random.uniform(key, (fan_out, fan_in), dtype, -limit, limit)


# ----------------------------------------------------------------------------- main
if __name__ == "__main__":
    # deterministic synthetic "bin_df" (genes per bin)
    MTL_feature_dim = 32          # D
    MTL_token_num = 4             # bin_no
    B = 2
    genes_per_bin = [3, 5, 2, 7]
    activation = True             # ReLU head activation

    key = jax.random.PRNGKey(0)
    k_tok, k_w = jax.random.split(key)

    # MTL_tokens: [B, bin_no, D]
    tokens = jax.random.normal(k_tok, (B, MTL_token_num, MTL_feature_dim),
                               dtype=jnp.float32)

    # per-bin Linear params (torch layout: weight (G_i, D), bias zeros)
    w_keys = jax.random.split(k_w, MTL_token_num)
    weight_list = [np.asarray(xavier_uniform(w_keys[i], g, MTL_feature_dim))
                   for i, g in enumerate(genes_per_bin)]
    bias_list = [np.zeros((g,), dtype=np.float32) for g in genes_per_bin]

    w_bd, b_bd = pack_block_diagonal(weight_list, bias_list,
                                     MTL_feature_dim, genes_per_bin)

    # ---- run kernel once and block on the device result ---------------------
    tm = B if B <= 256 else 256
    out_dev = _device_forward(tokens, w_bd, b_bd, activation, tm)
    jax.block_until_ready(out_dev)

    # ---- full module-equivalent forward (host glue) --------------------------
    preds = mtl_binning_heads_forward(tokens, w_bd, b_bd, genes_per_bin,
                                      activation=activation)

    # ---- reference check (plain NumPy) --------------------------------------
    tok_np = np.asarray(tokens)
    ref_list = []
    for i, g in enumerate(genes_per_bin):
        y = tok_np[:, i] @ weight_list[i].T + bias_list[i]
        if activation:
            y = np.maximum(y, 0.0)
        for v in y.reshape(-1):
            ref_list.append(np.float32(v).reshape(1, 1))

    assert len(preds) == len(ref_list) == B * sum(genes_per_bin)
    for a, b in zip(preds, ref_list):
        assert a.shape == (1, 1)
        np.testing.assert_allclose(a, b, rtol=1e-5, atol=1e-5)

    print("KERNEL_OK")
</pallas_src>

<mosaic_0001>
module attributes {stable_mosaic.version = 11 : i64} {
  func.func @head_kernel(%arg0: i32, %arg1: memref<2x128xf32, #tpu.memory_space<vmem>>, %arg2: memref<128x128xf32, #tpu.memory_space<vmem>>, %arg3: memref<1x128xf32, #tpu.memory_space<vmem>>, %arg4: memref<2x128xf32, #tpu.memory_space<vmem>>) attributes {dimension_semantics = [#tpu.dimension_semantics<parallel>], iteration_bounds = array<i64: 1>, scalar_prefetch = 0 : i64, scratch_operands = 0 : i64, tpu.core_type = #tpu.core_type<tc>, window_params = [{transform_indices = @transform_0, window_bounds = array<i64: 2, 128>}, {pipeline_mode = #tpu.pipeline_mode<synchronous>, transform_indices = @transform_1, window_bounds = array<i64: 128, 128>}, {pipeline_mode = #tpu.pipeline_mode<synchronous>, transform_indices = @transform_2, window_bounds = array<i64: 1, 128>}, {transform_indices = @transform_3, window_bounds = array<i64: 2, 128>}]} {
    %c0 = arith.constant 0 : index
    %c0_0 = arith.constant 0 : index
    %0 = vector.load %arg1[%c0, %c0_0] : memref<2x128xf32, #tpu.memory_space<vmem>>, vector<2x128xf32>
    %c0_1 = arith.constant 0 : index
    %c0_2 = arith.constant 0 : index
    %1 = vector.load %arg2[%c0_1, %c0_2] : memref<128x128xf32, #tpu.memory_space<vmem>>, vector<128x128xf32>
    %cst = arith.constant dense<0.000000e+00> : vector<2x128xf32>
    %2 = tpu.matmul %0, %1, %cst {dimension_numbers = #tpu.dot_dimension_numbers<[1], [0], [0], [1], [0, 0, 1, 1], [], []>} : vector<2x128xf32>, vector<128x128xf32>, vector<2x128xf32> -> vector<2x128xf32>
    %c0_3 = arith.constant 0 : index
    %c0_4 = arith.constant 0 : index
    %3 = vector.load %arg3[%c0_3, %c0_4] : memref<1x128xf32, #tpu.memory_space<vmem>>, vector<1x128xf32>
    %4 = vector.broadcast %3 : vector<1x128xf32> to vector<2x128xf32>
    %5 = arith.addf %2, %4 : vector<2x128xf32>
    %cst_5 = arith.constant 0.000000e+00 : f32
    %6 = vector.broadcast %cst_5 : f32 to vector<2x128xf32>
    %7 = arith.maximumf %5, %6 : vector<2x128xf32>
    %c0_6 = arith.constant 0 : index
    %c0_7 = arith.constant 0 : index
    %8 = vector.load %arg4[%c0_6, %c0_7] : memref<2x128xf32, #tpu.memory_space<vmem>>, vector<2x128xf32>
    tpu.vector_store %arg4[%c0_6, %c0_7], %7 {strides = array<i32>} : memref<2x128xf32, #tpu.memory_space<vmem>>, vector<2x128xf32>,
    return
  }
  func.func @transform_0(%arg0: i32) -> (i32, i32) {
    %c0_i32 = arith.constant 0 : i32
    %c0_i32_0 = arith.constant 0 : i32
    return %arg0, %c0_i32 : i32, i32
  }
  func.func @transform_1(%arg0: i32) -> (i32, i32) {
    %c0_i32 = arith.constant 0 : i32
    %c0_i32_0 = arith.constant 0 : i32
    %c0_i32_1 = arith.constant 0 : i32
    return %c0_i32, %c0_i32_0 : i32, i32
  }
  func.func @transform_2(%arg0: i32) -> (i32, i32) {
    %c0_i32 = arith.constant 0 : i32
    %c0_i32_0 = arith.constant 0 : i32
    %c0_i32_1 = arith.constant 0 : i32
    return %c0_i32, %c0_i32_0 : i32, i32
  }
  func.func @transform_3(%arg0: i32) -> (i32, i32) {
    %c0_i32 = arith.constant 0 : i32
    %c0_i32_0 = arith.constant 0 : i32
    return %arg0, %c0_i32 : i32, i32
  }
}

</mosaic_0001>

<bundles_post_ra>
// kernel: _device_forward.1
= control target key start
LH: loop header
LB: loop body
LE: loop exit
PB: predicated region body
PF: predicated region fallthrough
CT: control target
= control target key end

     0   :  { %8 = vsyncpa [#allocation3], 0  ;;  %s329_s0 = inlined_call_operand.vmem [shape: f32[2,128], index: 0, kind: input, shape index: {}]   ;;  %s330_s1 = inlined_call_operand.hbm [shape: f32[128,128], index: 1, kind: input, shape index: {}]   ;;  %s331_s2 = inlined_call_operand.vmem [shape: f32[1,128], index: 2, kind: input, shape index: {}]   ;;  %s332_s3 = inlined_call_operand.hbm [shape: f32[2,128], index: 3, kind: output, shape index: {}]  }
   0x1   :  { %9 = vsyncpa [#allocation4], 0  ;;  %s272_s12 = smov [#allocation2]   ;;  %s224_s16 = scalar_lea.hbm %s330_s1, 2048 }
   0x2   :  { %s17_s13 = sshll.u32 %s272_s12, 4  ;;  %p225_p0 = scmp.ne.s32.totalorder %s330_s1, %s224_s16  ;;  %s18_s13 = int_to_ptr.vmem [resolvable:$true] %s17_s13 }
   0x3   :  { %p228_p1 = scmp.lt.u32.totalorder %s224_s16, %s330_s1 }
   0x5   :  { %p230_p2 = pnand %p228_p1, %p225_p0 }
   0x7   :  { %233 = shalt.err (!%p230_p2)
}
   0x8   :  { %s234_s21 = scalar_lea.vmem %s18_s13, 2048  ;;  %p239_p4 = scmp.lt.s32.totalorder %s18_s13, %s18_s13 }
   0x9   :  { %p235_p3 = scmp.ne.s32.totalorder %s18_s13, %s234_s21  ;;  %p240_p5 = scmp.lt.s32.totalorder %s234_s21, %s234_s21 }
   0xb   :  { %p241_p6 = por %p240_p5, %p239_p4 }
   0xd   :  { %p242_p7 = pnand %p241_p6, %p235_p3 }
   0xf   :  { %245 = shalt.err (!%p242_p7)
}
  0x10   :  { %s273_s22 = smov 128   ;;  %s274_s23 = smov 8  }
  0x11   :  { %23 = dma.hbm_to_vmem [thread:$0]  %s330_s1, 2048, %s18_s13, [#allocation3], %s273_s22, %s273_s22, %s274_s23  }
  0x12   :  { %268 = dma.done.wait [#allocation3], 2048  }
  0x13   :  { %269 = vsyncadd [#allocation3], 4294965248  ;;  %v275_v0 = vmov 0.0|0.0   ;;  %vm276_vm0 = vmmov 0   ;;  %v277_v1 = vmov 0.0   ;;  %v30_v2 = vld [vmem:[#allocation2] sm:$0xff] }
  0x14   :  { %193 = vmatprep.subr.bf16.mxu0 %v275_v0  ;;  %190 = vmatprep.mubr.msk.f32.mxu0 %vm276_vm0, %v277_v1  ;;  %v31_v3 = vld [vmem:[#allocation2 + $0x8] sm:$0xff]  ;;  %v32_v4 = vld [vmem:[#allocation2 + $0x10] sm:$0xff]  ;;  %v33_v6 = vld [vmem:[#allocation2 + $0x18] sm:$0xff]  ;;  %s278_s29 = smov [#allocation5]  }
  0x15   :  { %v194_v5 = vpack.c.bf16 %v31_v3, %v30_v2  ;;  %v197_v7 = vpack.c.bf16 %v33_v6, %v32_v4  ;;  %v34_v8 = vld [vmem:[#allocation2 + $0x20] sm:$0xff]  ;;  %v35_v9 = vld [vmem:[#allocation2 + $0x28] sm:$0xff]  ;;  %v36_v11 = vld [vmem:[#allocation2 + $0x30] sm:$0xff]  ;;  %s131_s30 = sshll.u32 %s278_s29, 4  ;;  %s132_s30 = int_to_ptr.vmem [resolvable:$true] %s131_s30 }
  0x16   :  { %v200_v10 = vpack.c.bf16 %v35_v9, %v34_v8  ;;  %v37_v12 = vld [vmem:[#allocation2 + $0x38] sm:$0xff]  ;;  %v38_v14 = vld [vmem:[#allocation2 + $0x40] sm:$0xff]  ;;  %v39_v15 = vld [vmem:[#allocation2 + $0x48] sm:$0xff]  ;;  %s246_s4 = scalar_lea.vmem %s132_s30, 32  ;;  %p251_p9 = scmp.lt.s32.totalorder %s132_s30, %s132_s30 }
  0x17   :  { %195 = vmatpush3.bf16.msra.mxu0 %v194_v5  ;;  %v203_v13 = vpack.c.bf16 %v37_v12, %v36_v11  ;;  %v206_v16 = vpack.c.bf16 %v39_v15, %v38_v14  ;;  %v40_v17 = vld [vmem:[#allocation2 + $0x50] sm:$0xff]  ;;  %v41_v18 = vld [vmem:[#allocation2 + $0x58] sm:$0xff]  ;;  %v42_v20 = vld [vmem:[#allocation2 + $0x60] sm:$0xff]  ;;  %p247_p8 = scmp.ne.s32.totalorder %s132_s30, %s246_s4  ;;  %p252_p10 = scmp.lt.s32.totalorder %s246_s4, %s246_s4 }
  0x18   :  { %196 = vmatprep.subr.bf16.mxu0 %v275_v0  ;;  %v209_v19 = vpack.c.bf16 %v41_v18, %v40_v17  ;;  %v43_v21 = vld [vmem:[#allocation2 + $0x68] sm:$0xff]  ;;  %v44_v23 = vld [vmem:[#allocation2 + $0x70] sm:$0xff]  ;;  %v45_v24 = vld [vmem:[#allocation2 + $0x78] sm:$0xff] }
  0x19   :  { %v212_v22 = vpack.c.bf16 %v43_v21, %v42_v20  ;;  %v215_v25 = vpack.c.bf16 %v45_v24, %v44_v23  ;;  %v29_v26 = vld [vmem:[%s329_s0] sm:$0x3]  ;;  %p253_p11 = por %p252_p10, %p251_p9 }
  0x1a   :  { %v140_v27 = vld [vmem:[%s331_s2] ss:$0 sm:$0xff] }
  0x1b   :  { %198 = vmatpush3.bf16.msra.mxu0 %v197_v7  ;;  %p254_p12 = pnand %p253_p11, %p247_p8 }
  0x1c   :  { %199 = vmatprep.subr.bf16.mxu0 %v275_v0 }
  0x1f   :  { %201 = vmatpush3.bf16.msra.mxu0 %v200_v10 }
  0x20   :  { %202 = vmatprep.subr.bf16.mxu0 %v275_v0 }
  0x23   :  { %204 = vmatpush3.bf16.msra.mxu0 %v203_v13 }
  0x24   :  { %205 = vmatprep.subr.bf16.mxu0 %v275_v0 }
  0x27   :  { %207 = vmatpush3.bf16.msra.mxu0 %v206_v16 }
  0x28   :  { %208 = vmatprep.subr.bf16.mxu0 %v275_v0 }
  0x2b   :  { %210 = vmatpush3.bf16.msra.mxu0 %v209_v19 }
  0x2c   :  { %211 = vmatprep.subr.bf16.mxu0 %v275_v0 }
  0x2f   :  { %213 = vmatpush3.bf16.msra.mxu0 %v212_v22 }
  0x30   :  { %214 = vmatprep.subr.bf16.mxu0 %v275_v0 }
  0x33   :  { %216 = vmatpush3.bf16.msra.mxu0 %v215_v25 }
  0x36   :  { %191 = vmatmul.mubr.f32.vlgmr.msra.gmra.mrb[0].mxu0 %v29_v26 }
 0x109   :  { %v119_v28 = vpop.f32.mrb[0].mxu0 }
 0x10a   :  { %v120_v29 = vadd.f32 %v140_v27, %v119_v28  ;;  %v192_v30 = vpop.f32.mrb[1].mxu0 }
 0x10c   :  { %v123_v31 = vmax.f32 %v120_v29, 0.0 }
 0x10e   :  { %124 = vst [vmem:[#allocation5] sm:$0x3] %v123_v31 }
 0x10f   :  { %257 = shalt.err (!%p254_p12)
}
 0x110   :  { %s258_s6 = scalar_lea.hbm %s332_s3, 32 }
 0x111   :  { %p259_p13 = scmp.ne.s32.totalorder %s332_s3, %s258_s6  ;;  %p262_p0 = scmp.lt.u32.totalorder %s258_s6, %s332_s3 }
 0x113   :  { %p264_p1 = pnand %p262_p0, %p259_p13 }
 0x115   :  { %267 = shalt.err (!%p264_p1)
}
 0x116   :  { %134 = dma.vmem_to_hbm [thread:$0]  %s132_s30, 32, %s332_s3, [#allocation4]  }
 0x117   :  { %270 = dma.done.wait [#allocation4], 32  }
 0x118   :  { %271 = vsyncadd [#allocation4], 4294967264 }
 0x119   :  { %138 = vsyncpa [#allocation3], 1 }
 0x11a   :  { %139 = vsyncpa [#allocation4], 1 }

</bundles_post_ra>
